<compile_context>
chip_gen: v6e
topology: v6e:2x2x1
jax: 0.10.0
libtpu: 0.0.40
codegen_flags: <defaults>
</compile_context>

<pallas_src>
import math

import jax
import jax.numpy as jnp
from jax.experimental import pallas as pl
from jax.experimental.pallas import tpu as pltpu


def _build_pe_table(d_model: int, max_len: int = 5000) -> jnp.ndarray:
    """Sinusoidal PE table, identical to the PyTorch __init__ (used for the reference)."""
    position = jnp.arange(max_len, dtype=jnp.float32)[:, None]                # (max_len, 1)
    div_term = jnp.exp(
        jnp.arange(0, d_model, 2, dtype=jnp.float32) * (-math.log(10000.0) / d_model)
    )
    angles = position * div_term                                              # (max_len, ceil(d/2))
    pe = jnp.zeros((max_len, d_model), dtype=jnp.float32)
    pe = pe.at[:, 0::2].set(jnp.sin(angles))
    # Trim cos part so odd d_model works (PyTorch original would raise there).
    pe = pe.at[:, 1::2].set(jnp.cos(angles)[:, : d_model // 2])
    return pe


def _build_pe_basis(d_model: int) -> jnp.ndarray:
    """(2, d_model) f32: row 0 = per-column angular frequency omega, row 1 = phase.

    pe[pos, j] = sin(pos * omega[j] + phase[j]) reproduces the sin/cos table:
      even j: omega = exp(j * (-ln 1e4 / d)), phase = 0      -> sin
      odd  j: omega = exp((j-1) * (-ln 1e4 / d)), phase = pi/2 -> cos
    """
    j = jnp.arange(d_model, dtype=jnp.float32)
    even = jnp.floor(j / 2.0) * 2.0
    omega = jnp.exp(even * (-math.log(10000.0) / d_model))
    phase = (j - even) * (math.pi / 2.0)
    return jnp.stack([omega, phase], axis=0)


def _pe_add_kernel(x_ref, basis_ref, o_ref):
    # x_ref / o_ref: (TS, D) -- batch dim squeezed out of the view.
    # basis_ref: (2, D) f32 -- omega row / phase row.
    ts = x_ref.shape[0]
    s = pl.program_id(0)
    pos = (jax.lax.broadcasted_iota(jnp.int32, (ts, 1), 0) + s * ts).astype(jnp.float32)
    angle = pos * basis_ref[0:1, :] + basis_ref[1:2, :]        # (TS, D) broadcast
    pe = jnp.sin(angle)                                        # EUP; hidden under DMA
    o_ref[...] = (x_ref[...].astype(jnp.float32) + pe).astype(o_ref.dtype)


def _vmem_capacity_bytes() -> int:
    try:
        cap = getattr(pltpu.get_tpu_info(), "vmem_capacity_bytes", None)
        if cap:
            return int(cap)
    except Exception:
        pass
    return 64 << 20  # conservative (v7x per-TensorCore physical)


def positional_encoding(x: jnp.ndarray, pe_basis: jnp.ndarray, *, max_len: int = 5000) -> jnp.ndarray:
    """x: (B, S, d_model); returns x + pe[:S] with identical shape/dtype."""
    B, S, D = x.shape
    if pe_basis.shape != (2, D):
        raise ValueError(f"pe_basis shape {pe_basis.shape} != (2, {D})")
    if S > max_len:
        raise ValueError(f"seq_len {S} exceeds positional-encoding max_len {max_len}")

    itemsize = jnp.dtype(x.dtype).itemsize
    pack = 8 * max(1, 4 // itemsize)           # sublane pack: 8 f32, 16 bf16, 32 int8

    vmem_cap = _vmem_capacity_bytes()
    # x + out, each double-buffered => 4 tiles resident; keep that under ~1/4 of physical VMEM,
    # target ~4 MiB per tile (measured ~85% of HBM roofline at 512+ rows for D=1024 f32).
    tile_budget = min(4 << 20, vmem_cap // 16)
    ts = tile_budget // max(1, D * itemsize)
    ts = max(pack, (ts // pack) * pack)
    ts = min(ts, S)
    if S <= pack:
        ts = S

    num_s_tiles = pl.cdiv(S, ts)
    # v7x megacore: keep at least 2 grid steps so both TensorCores get work.
    if B * num_s_tiles < 2 and S > pack:
        half = pl.cdiv(pl.cdiv(S, 2), pack) * pack
        if half < S:
            ts = half
            num_s_tiles = pl.cdiv(S, ts)

    block_bytes = ts * D * itemsize
    footprint = 4 * block_bytes                       # x + out, double-buffered
    vmem_limit = int(min(vmem_cap, max(32 << 20, 2 * footprint)))

    grid_spec = pltpu.PrefetchScalarGridSpec(
        num_scalar_prefetch=0,
        # Inner axis = batch: the grid walks all B batch elements for a given seq-tile before
        # advancing s, so the in-kernel PE row block is effectively reused across the batch.
        grid=(num_s_tiles, B),
        in_specs=[
            pl.BlockSpec((pl.Squeezed(), ts, D), lambda s, b: (b, s, 0)),   # x
            pl.BlockSpec((2, D), lambda s, b: (0, 0)),                      # pe basis (tiny, constant)
        ],
        out_specs=pl.BlockSpec((pl.Squeezed(), ts, D), lambda s, b: (b, s, 0)),
    )

    return pl.pallas_call(
        _pe_add_kernel,
        out_shape=jax.ShapeDtypeStruct((B, S, D), x.dtype),
        grid_spec=grid_spec,
        input_output_aliases={0: 0},  # output may reuse x's HBM buffer (donate x under jit)
        compiler_params=pltpu.CompilerParams(
            dimension_semantics=("parallel", "parallel"),
            vmem_limit_bytes=vmem_limit,
        ),
    )(x, pe_basis.astype(jnp.float32))


if __name__ == "__main__":
    B, S, D = 2, 8, 32
    max_len = 64  # small synthetic max_len (>= S); same construction as max_len=5000

    key = jax.random.PRNGKey(0)
    x = jax.random.normal(key, (B, S, D), dtype=jnp.float32)

    pe_table = _build_pe_table(D, max_len=max_len)   # f32 reference table (PyTorch semantics)
    pe_basis = _build_pe_basis(D)

    # Compute the reference BEFORE the kernel call (the kernel may alias x's buffer).
    ref = jax.block_until_ready(x + pe_table[None, :S, :])

    out = positional_encoding(x, pe_basis, max_len=max_len)
    out = jax.block_until_ready(out)

    assert out.shape == (B, S, D)
    assert out.dtype == x.dtype
    assert jnp.allclose(out, ref, atol=1e-5), "mismatch vs reference"

    print("KERNEL_OK")
</pallas_src>

<mosaic_0001>
module attributes {stable_mosaic.version = 11 : i64} {
  func.func @_pe_add_kernel(%arg0: i32, %arg1: i32, %arg2: memref<1x8x32xf32, #tpu.memory_space<vmem>>, %arg3: memref<2x32xf32, #tpu.memory_space<vmem>>, %arg4: memref<1x8x32xf32, #tpu.memory_space<vmem>>) attributes {dimension_semantics = [#tpu.dimension_semantics<parallel>, #tpu.dimension_semantics<parallel>], iteration_bounds = array<i64: 1, 2>, scalar_prefetch = 0 : i64, scratch_operands = 0 : i64, tpu.core_type = #tpu.core_type<tc>, window_params = [{transform_indices = @transform_0, window_bounds = array<i64: 1, 8, 32>}, {pipeline_mode = #tpu.pipeline_mode<synchronous>, transform_indices = @transform_1, window_bounds = array<i64: 2, 32>}, {transform_indices = @transform_2, window_bounds = array<i64: 1, 8, 32>}]} {
    %0 = tpu.iota {dimensions = array<i32: 0>} : vector<8x1xi32>
    %c8_i32 = arith.constant 8 : i32
    %1 = arith.muli %arg0, %c8_i32 : i32
    %2 = vector.broadcast %1 : i32 to vector<8x1xi32>
    %3 = arith.addi %0, %2 : vector<8x1xi32>
    %4 = arith.sitofp %3 : vector<8x1xi32> to vector<8x1xf32>
    %c0 = arith.constant 0 : index
    %c0_0 = arith.constant 0 : index
    %5 = vector.load %arg3[%c0, %c0_0] : memref<2x32xf32, #tpu.memory_space<vmem>>, vector<1x32xf32>
    %6 = vector.broadcast %4 : vector<8x1xf32> to vector<8x32xf32>
    %7 = vector.broadcast %5 : vector<1x32xf32> to vector<8x32xf32>
    %8 = arith.mulf %6, %7 : vector<8x32xf32>
    %c1 = arith.constant 1 : index
    %c0_1 = arith.constant 0 : index
    %9 = vector.load %arg3[%c1, %c0_1] : memref<2x32xf32, #tpu.memory_space<vmem>>, vector<1x32xf32>
    %10 = vector.broadcast %9 : vector<1x32xf32> to vector<8x32xf32>
    %11 = arith.addf %8, %10 : vector<8x32xf32>
    %12 = math.sin %11 : vector<8x32xf32>
    %c0_2 = arith.constant 0 : index
    %c0_3 = arith.constant 0 : index
    %c0_4 = arith.constant 0 : index
    %13 = vector.load %arg2[%c0_2, %c0_3, %c0_4] : memref<1x8x32xf32, #tpu.memory_space<vmem>>, vector<1x8x32xf32>
    %14 = vector.shape_cast %13 : vector<1x8x32xf32> to vector<8x32xf32>
    %15 = arith.addf %14, %12 : vector<8x32xf32>
    %c0_5 = arith.constant 0 : index
    %c0_6 = arith.constant 0 : index
    %c0_7 = arith.constant 0 : index
    %16 = vector.load %arg4[%c0_5, %c0_6, %c0_7] : memref<1x8x32xf32, #tpu.memory_space<vmem>>, vector<1x8x32xf32>
    %17 = vector.shape_cast %16 : vector<1x8x32xf32> to vector<8x32xf32>
    %18 = vector.shape_cast %15 : vector<8x32xf32> to vector<1x8x32xf32>
    tpu.vector_store %arg4[%c0_5, %c0_6, %c0_7], %18 {strides = array<i32>} : memref<1x8x32xf32, #tpu.memory_space<vmem>>, vector<1x8x32xf32>,
    return
  }
  func.func @transform_0(%arg0: i32, %arg1: i32) -> (i32, i32, i32) {
    %c0_i32 = arith.constant 0 : i32
    %c0_i32_0 = arith.constant 0 : i32
    return %arg1, %arg0, %c0_i32 : i32, i32, i32
  }
  func.func @transform_1(%arg0: i32, %arg1: i32) -> (i32, i32) {
    %c0_i32 = arith.constant 0 : i32
    %c0_i32_0 = arith.constant 0 : i32
    %c0_i32_1 = arith.constant 0 : i32
    return %c0_i32, %c0_i32_0 : i32, i32
  }
  func.func @transform_2(%arg0: i32, %arg1: i32) -> (i32, i32, i32) {
    %c0_i32 = arith.constant 0 : i32
    %c0_i32_0 = arith.constant 0 : i32
    return %arg1, %arg0, %c0_i32 : i32, i32, i32
  }
}

</mosaic_0001>

<bundles_post_ra>
// kernel: tpu_custom_call.1
= control target key start
LH: loop header
LB: loop body
LE: loop exit
PB: predicated region body
PF: predicated region fallthrough
CT: control target
= control target key end

     0   :  { %7 = vsyncpa [#allocation3], 0  ;;  %s793_s0 = inlined_call_operand.hbm [shape: f32[2,8,32], index: 0, kind: input, shape index: {}, may-alias: {0,2}]   ;;  %s794_s1 = inlined_call_operand.vmem [shape: f32[2,32], index: 1, kind: input, shape index: {}]   ;;  %s795_s2 = inlined_call_operand.hbm [shape: f32[2,8,32], index: 2, kind: output, shape index: {}, may-alias: {0,2}]  }
   0x1   :  { %9 = vsyncpa [#allocation3 + $0x1], 0 }
   0x2   :  { %10 = vsyncpa [#allocation4], 0 }
   0x3   :  { %12 = vsyncpa [#allocation4 + $0x1], 0  ;;  %s625_s9 = smov 0   ;;  %s627_s10 = smov 0  }
   0x4   :  { %s629_s11 = smov 0   ;;  %s631_s12 = smov 0  }
   0x5   :  { %s633_s13 = smov 0   ;;  %s635_s14 = smov 0  }
   0x6 LB: > { %s397_s15 = sadd.s32 4294967295, %s600_s14   ;;  %s398_s16 = sadd.s32 4294967294, %s600_s14   ;;  %s600_s14 = sphi %s635_s14, %s18_s14   ;;  %s596_s13 = sphi %s633_s13, %s807_s13   ;;  %s592_s12 = sphi %s631_s12, %s806_s12   ;;  %s588_s11 = sphi %s629_s11, %s805_s11   ;;  %s584_s10 = sphi %s627_s10, %s804_s10   ;;  %s580_s9 = sphi %s625_s9, %s803_s9  }
   0x7   : > { %s27_s17 = sadd.s32 1, %s596_s13  ;;  %s39_s18 = sadd.s32 1, %s588_s11 }
   0x8   : > { %p28_p0 = scmp.ge.s32.totalorder %s27_s17, 2  ;;  %p46_p1 = scmp.ne.s32.totalorder %s588_s11, %s584_s10 }
   0x9   : > { %p47_p2 = scmp.eq.s32.totalorder %s600_s14, 0  ;;  %p52_p3 = scmp.ne.s32.totalorder %s584_s10, %s580_s9 }
   0xa   : > { %s809_s17 = smov (%p28_p0, %s27_s17), 0  ;;  %p53_p5 = scmp.eq.s32.totalorder %s397_s15, 0 }
   0xb   : > { %p666_p4 = por %p47_p2, %p46_p1  ;;  %s34_s20 = ssub.s32 %s596_s13, %s809_s17 }
   0xc   : > { %p99_p6 = scmp.eq.s32.totalorder %s397_s15, 1  ;;  %p37_p7 = scmp.eq.s32.totalorder %s34_s20, 0 }
   0xd   : > { %p672_p8 = por %p53_p5, %p52_p3  ;;  %p105_p10 = scmp.eq.s32.totalorder %s398_s16, 1 }
   0xe   : > { %p676_p9 = por %p99_p6, %p46_p1  ;;  %p432_p13 = scmp.lt.s32.totalorder %s600_s14, 2 }
   0xf   : > { %s681_s23 = scalar_select %p37_p7, %s588_s11, %s39_s18  }
  0x10   : > { %p683_p11 = por %p105_p10, %p52_p3  ;;  %s128_s25 = sand.u32 1, %s588_s11  }
  0x11   : > { %s401_s26 = sshll.u32 %s128_s25, 3  ;;  %s402_s27 = sshll.u32 %s596_s13, 7 }
  0x12   : > { %s799_s24 = scalar_select %p683_p11, 1, 0 }
  0x13   : > { %s138_s30 = scalar_lea.hbm %s793_s0, %s402_s27  ;;  %s132_s3 = scalar_lea.vmem [#allocation2], %s401_s26 }
  0x14   : > { %s140_s4 = sshll.u32 %s132_s3, 4  ;;  %p696_p0 = pnand %p432_p13, %p666_p4  ;;  %s141_s4 = int_to_ptr.vmem [resolvable:$true] %s140_s4 }
  0x15   : > { %p403_p1 = scmp.ge.s32.totalorder %s600_s14, 1  ;;  %p145_p2 = scmp.lt.s32.totalorder %s600_s14, 3 }
  0x16   : > { %s129_s6 = scalar_lea.sflag [#allocation3], %s128_s25  ;;  %p494_p3 = pneg %p696_p0 }
  0x17   : > { %s505_s7 = scalar_lea.vmem %s141_s4, 128  ;;  %s602_s8 = smov [#allocation2]  }
  0x18   : > { %p506_p5 = scmp.ne.s32.totalorder %s141_s4, %s505_s7  ;;  %s510_s15 = sshll.u32 %s602_s8, 4  ;;  %s511_s15 = int_to_ptr.vmem [resolvable:$false] %s510_s15 }
  0x19   : > { %s512_s16 = scalar_lea.vmem %s511_s15, 256  ;;  %p513_p10 = scmp.lt.s32.totalorder %s141_s4, %s511_s15 }
  0x1a   : > { %p508_p6 = pnand %p506_p5, %p494_p3  ;;  %p514_p12 = scmp.lt.s32.totalorder %s512_s16, %s505_s7 }
  0x1c   : > { %p509_p7 = pneg %p508_p6  ;;  %p515_p4 = por %p514_p12, %p513_p10 }
  0x1e   : > { %p516_p13 = pnand %p515_p4, %p509_p7 }
  0x20   : > { %519 = shalt.err (!%p516_p13)
}
  0x21   : > { %427 = dma.hbm_to_vmem [thread:$0]  (!%p696_p0), %s138_s30, 128, %s141_s4, %s129_s6  }
  0x22   : > { %p146_p11 = pnand %p403_p1, %p145_p2 }
  0x23   : > { %s711_s18 = sand.u32 (!%p146_p11), 1, %s584_s10  }
  0x24   : > { %149 = sbr.rel (%p146_p11) target bundleno = 150 (0x96), region = 28  ;;  %s404_s19 = sshll.u32 (!%p146_p11), %s711_s18, 3 }
  0x25   : > { %s152_s20 = scalar_lea.sflag (!%p146_p11), [#allocation3], %s711_s18  ;;  %s717_s25 = scalar_lea.vmem (!%p146_p11), [#allocation2], %s404_s19 }
  0x29   : > { %571 = dma.done.wait (%p672_p8), %s152_s20, 128  }
  0x2a   : > { %573 = vsyncadd (%p672_p8), %s152_s20, 4294967168  ;;  %v176_v0 = vlaneseq  ;;  %v406_v3 = vld [vmem:[%s794_s1] ss:$0 sm:$0xff]  ;;  %v407_v4 = vld [vmem:[%s794_s1 + $0x1] ss:$0 sm:$0xff]  ;;  %s175_s21 = scalar_lea.vmem [#allocation5], %s404_s19 }
  0x2b   : > { %v603_v18 = vmov 683565275   ;;  %v604_v20 = vmov 2475754826   ;;  %v605_v22 = vmov 2131351028  }
  0x2c   : > { %v177_v1 = vshrl.u32 %v176_v0, 7  ;;  %v606_v24 = vmov 2102212464   ;;  %v607_v26 = vmov 920167782   ;;  %s317_s30 = sshll.u32 %s175_s21, 4  ;;  %s318_s30 = int_to_ptr.vmem [resolvable:$true] %s317_s30 }
  0x2d   : > { %v608_v33 = vmov 1326507024   ;;  %s413_s3 = sshll.u32 %s592_s12, 7  ;;  %vm300_vm13 = vcmask 261120   ;;  %s303_s7 = scalar_lea.sflag [#allocation4], %s711_s18 }
  0x2e   : > { %v181_v2 = vcvt.s32.f32 %v177_v1  ;;  %s315_s6 = scalar_lea.hbm %s795_s2, %s413_s3  ;;  %s520_s8 = scalar_lea.vmem %s318_s30, 128 }
  0x2f   : > { %p521_p8 = scmp.ne.s32.totalorder %s318_s30, %s520_s8  ;;  %s609_s15 = smov [#allocation5]  }
  0x30   : > { %v187_v5 = vmul.f32 %v406_v3, %v181_v2  ;;  %s524_s16 = sshll.u32 %s609_s15, 4  ;;  %s525_s16 = int_to_ptr.vmem [resolvable:$false] %s524_s16 }
  0x31   : > { %p522_p11 = pnand %p521_p8, %p676_p9  ;;  %s526_s12 = scalar_lea.vmem %s525_s16, 256 }
  0x32   : > { %v729_v6 = vadd.f32 %v407_v4, %v187_v5  ;;  %p527_p0 = scmp.lt.s32.totalorder %s318_s30, %s525_s16  ;;  %p528_p1 = scmp.lt.s32.totalorder %s526_s12, %s520_s8 }
  0x33   : > { %p523_p12 = pneg %p522_p11 }
  0x34   : > { %v197_v7 = vand.u32 2139095040, %v729_v6  ;;  %v194_v9 = vand.u32 2147483647, %v729_v6  ;;  %vm196_vm7 = vcmp.lt.s32.totalorder %v729_v6, 0  ;;  %vm286_vm12 = vweird.f32 %v729_v6  ;;  %p529_p2 = por %p528_p1, %p527_p0 }
  0x36   : > { %v198_v8 = vshrl.u32 %v197_v7, 23  ;;  %v201_v12 = vand.u32 8388607, %v194_v9  ;;  %vm195_vm8 = vcmp.le.f32.partialorder %v194_v9, 0.7853982  ;;  %p530_p3 = pnand %p529_p2, %p523_p12 }
  0x38   : > { %v408_v10 = vadd.s32 4294967169, %v198_v8  ;;  %v202_v15 = vor.u32 8388608, %v201_v12 }
  0x3a   : > { %v204_v11 = vadd.s32 1, %v408_v10  ;;  %v242_v35 = vshll.u32 %v202_v15, 8 }
  0x3c   : > { %vm205_vm0 = vcmp.gt.s32.totalorder %v204_v11, 0 }
  0x3d   : > { %v206_v13 = vsel %vm205_vm0, %v204_v11, 0 }
  0x3e   : > { %v208_v14 = vand.u32 31, %v206_v13  ;;  %v207_v16 = vshrl.u32 %v206_v13, 5 }
  0x40   : > { %v209_v17 = vsub.s32 32, %v208_v14  ;;  %v211_v19 = vshll.u32 %v603_v18, %v208_v14  ;;  %v214_v21 = vshll.u32 %v604_v20, %v208_v14  ;;  %v217_v23 = vshll.u32 %v605_v22, %v208_v14 }
  0x41   : > { %v220_v25 = vshll.u32 %v606_v24, %v208_v14  ;;  %v223_v27 = vshll.u32 %v607_v26, %v208_v14  ;;  %vm226_vm1 = vcmp.lt.s32.totalorder %v207_v16, 1  ;;  %vm229_vm2 = vcmp.lt.s32.totalorder %v207_v16, 4 }
  0x42   : > { %v210_v28 = vshrl.u32 %v603_v18, %v209_v17  ;;  %v212_v29 = vshrl.u32 %v604_v20, %v209_v17  ;;  %v215_v30 = vshrl.u32 %v605_v22, %v209_v17  ;;  %v218_v31 = vshrl.u32 %v606_v24, %v209_v17 }
  0x43   : > { %v221_v32 = vshrl.u32 %v607_v26, %v209_v17  ;;  %v224_v34 = vshrl.u32 %v608_v33, %v209_v17  ;;  %vm227_vm3 = vcmp.lt.s32.totalorder %v207_v16, 2  ;;  %vm228_vm4 = vcmp.lt.s32.totalorder %v207_v16, 3  ;;  %v298_v33 = vld [vmem:[%s717_s25] sm:$0xff] }
  0x44   : > { %v213_v36 = vor.u32 %v212_v29, %v211_v19  ;;  %v216_v37 = vor.u32 %v215_v30, %v214_v21  ;;  %v219_v38 = vor.u32 %v218_v31, %v217_v23 }
  0x45   : > { %v222_v39 = vor.u32 %v221_v32, %v220_v25  ;;  %v225_v40 = vor.u32 %v224_v34, %v223_v27 }
  0x46   : > { %v230_v41 = vsel %vm226_vm1, %v210_v28, %v213_v36  ;;  %v231_v42 = vsel %vm229_vm2, %v219_v38, 2102212464  ;;  %v234_v43 = vsel %vm226_vm1, %v213_v36, %v216_v37  ;;  %v238_v44 = vsel %vm226_vm1, %v216_v37, %v219_v38 }
  0x47   : > { %v232_v45 = vsel %vm228_vm4, %v216_v37, %v231_v42  ;;  %v235_v46 = vsel %vm229_vm2, %v222_v39, 920167782  ;;  %v239_v47 = vsel %vm229_vm2, %v225_v40, 1326507024 }
  0x48   : > { %v236_v48 = vsel %vm228_vm4, %v219_v38, %v235_v46  ;;  %v240_v49 = vsel %vm228_vm4, %v222_v39, %v239_v47  ;;  %v233_v50 = vsel %vm227_vm3, %v230_v41, %v232_v45 }
  0x49   : > { %v237_v51 = vsel %vm227_vm3, %v234_v43, %v236_v48  ;;  %v241_v52 = vsel %vm227_vm3, %v238_v44, %v240_v49  ;;  %v249_v57 = vmul.u32 %v242_v35, %v233_v50 }
  0x4a   : > { %v735_v53 = vmul.u32.u64.low %v242_v35, %v241_v52  ;;  %v736_v54 = vmul.u32.u64.high %v242_v35, %v241_v52, %v735_v53  ;;  %v738_v55 = vmul.u32.u64.low %v242_v35, %v237_v51  ;;  %v739_v56 = vmul.u32.u64.high %v242_v35, %v237_v51, %v738_v55 }
  0x4c   : > { %vm251_vm5 = vc.u32 %v736_v54, %v738_v55  ;;  %v252_v58 = vadd.s32 1, %v739_v56  ;;  %v250_v5 = vadd.s32 %v738_v55, %v736_v54 }
  0x4e   : > { %v253_v59 = vsel %vm251_vm5, %v252_v58, %v739_v56 }
  0x4f   : > { %v254_v60 = vadd.s32 %v253_v59, %v249_v57 }
  0x51   : > { %v255_v61 = vadd.s32 536870912, %v254_v60 }
  0x53   : > { %v256_v62 = vshrl.u32 %v255_v61, 30 }
  0x55   : > { %v257_v63 = vshll.u32 %v256_v62, 30  ;;  %v280_v20 = vsub.s32 4, %v256_v62 }
  0x57   : > { %v258_v0 = vsub.s32 %v254_v60, %v257_v63  ;;  %v281_v23 = vsel %vm196_vm7, %v280_v20, %v256_v62 }
  0x58   : > { %v283_v25 = vsel %vm195_vm8, 0, %v281_v23 }
  0x59   : > { %v260_v1 = vsub.s32 0, %v258_v0  ;;  %v287_v26 = vadd.s32 3, %v283_v25 }
  0x5b   : > { %v409_v2 = vmin.u32 %v260_v1, %v258_v0  ;;  %v288_v27 = vand.u32 3, %v287_v26 }
  0x5d   : > { %v262_v3 = vclz %v409_v2  ;;  %vm293_vm9 = vcmp.eq.s32.totalorder %v288_v27, 2  ;;  %vm290_vm10 = vcmp.eq.s32.totalorder %v288_v27, 0  ;;  %vm289_vm11 = vcmp.lt.s32.totalorder %v288_v27, 2 }
  0x5f   : > { %v410_v4 = vadd.s32 4294967294, %v262_v3 }
  0x61   : > { %vm411_vm6 = vcmp.lt.s32.totalorder %v410_v4, 0 }
  0x62   : > { %v265_v7 = vsel %vm411_vm6, 0, %v410_v4 }
  0x63   : > { %v266_v8 = vsub.s32 32, %v265_v7  ;;  %v267_v10 = vshll.u32 %v258_v0, %v265_v7  ;;  %v270_v11 = vsub.s32 4294967266, %v265_v7 }
  0x65   : > { %v268_v12 = vshrl.u32 %v250_v5, %v266_v8  ;;  %v271_v13 = vadd.s32 127, %v270_v11 }
  0x67   : > { %v269_v14 = vor.u32 %v268_v12, %v267_v10  ;;  %v272_v15 = vshll.u32 %v271_v13, 23 }
  0x69   : > { %v273_v16 = vor.u32 4788187, %v272_v15  ;;  %v276_v17 = vcvt.s32.f32 %v269_v14 }
  0x6b   : > { %v274_v18 = vand.u32 2147483647, %v273_v16 }
  0x6d   : > { %v277_v19 = vmul.f32 %v276_v17, %v274_v18 }
  0x6f   : > { %v278_v21 = vxor.u32 2147483648, %v277_v19 }
  0x71   : > { %v279_v22 = vsel %vm196_vm7, %v278_v21, %v277_v19 }
  0x72   : > { %v282_v24 = vsel %vm195_vm8, %v729_v6, %v279_v22 }
  0x73   : > { %488 = vcosq.f32 %v282_v24 }
  0x74   : > { %490 = vsinq.f32 %v282_v24 }
  0x80   : > { %v489_v28 = vpop.eup %488 }
  0x81   : > { %v491_v29 = vpop.eup %490  ;;  %v294_v30 = vxor.u32 2147483648, %v489_v28 }
  0x82   : > { %v291_v9 = vxor.u32 2147483648, %v491_v29 }
  0x83   : > { %v295_v31 = vsel %vm293_vm9, %v294_v30, %v491_v29 }
  0x84   : > { %v292_v32 = vsel %vm290_vm10, %v489_v28, %v291_v9 }
  0x85   : > { %v296_v34 = vsel %vm289_vm11, %v292_v32, %v295_v31 }
  0x86   : > { %v297_v35 = vsel %vm286_vm12, nan, %v296_v34 }
  0x87   : > { %v299_v36 = vadd.f32 %v298_v33, %v297_v35 }
  0x89   : > { %301 = vst.msk [vmem:[%s175_s21] sm:$0xff] %vm300_vm13, %v299_v36 }
  0x8a   : > { %533 = shalt.err (!%p530_p3)
}
  0x8b   : > { %s534_s19 = scalar_lea.hbm %s315_s6, 128  ;;  %s538_s25 = scalar_lea.hbm %s795_s2, 256 }
  0x8c   : > { %p535_p5 = scmp.ne.s32.totalorder %s315_s6, %s534_s19  ;;  %p539_p10 = scmp.lt.s32.totalorder %s315_s6, %s795_s2 }
  0x8d   : > { %p540_p4 = scmp.lt.s32.totalorder %s538_s25, %s534_s19 }
  0x8e   : > { %p536_p6 = pnand %p535_p5, %p676_p9 }
  0x8f   : > { %p541_p13 = por %p540_p4, %p539_p10 }
  0x90   : > { %p537_p7 = pneg %p536_p6 }
  0x92   : > { %p542_p8 = pnand %p541_p13, %p537_p7 }
  0x94   : > { %545 = shalt.err (!%p542_p8)
}
  0x95   : > { %422 = dma.vmem_to_hbm [thread:$0]  (%p676_p9), %s318_s30, 128, %s315_s6, %s303_s7  }
  0x96 PF: > { %s329_s28 = sand.u32 1, %s580_s9   ;;  %p801_p11 = scmp.ne.s32.totalorder %s799_s24, 0 }
  0x97   : > { %p802_p12 = scmp.ge.s32.totalorder %s600_s14, 2  ;;  %s330_s29 = scalar_lea.sflag [#allocation4], %s329_s28 }
  0x99   : > { %p429_p0 = pnand %p802_p12, %p801_p11 }
  0x9b   : > { %p430_p1 = pneg %p429_p0 }
  0x9d   : > { %575 = dma.done.wait (%p430_p1), %s330_s29, 128  }
  0x9e   : > { %577 = vsyncadd (%p430_p1), %s330_s29, 4294967168  ;;  %s18_s14 = sadd.s32 1, %s600_s14   ;;  %s803_s9 = smov %s584_s10 }
  0x9f   : > { %p15_p2 = scmp.ge.s32.totalorder %s18_s14, 4   ;;  %s804_s10 = smov %s588_s11 }
  0xa0   : > { %s805_s11 = smov %s681_s23  ;;  %s806_s12 = smov %s596_s13 }
  0xa1   : > { %s807_s13 = smov %s809_s17  ;;  %17 = sbr.rel (!%p15_p2) target bundleno = 6 (0x6), region = 73 }
  0xa6   :  { %335 = vsyncpa [#allocation3], 1 }
  0xa7   :  { %337 = vsyncpa [#allocation3 + $0x1], 1 }
  0xa8   :  { %338 = vsyncpa [#allocation4], 1 }
  0xa9   :  { %340 = vsyncpa [#allocation4 + $0x1], 1 }

</bundles_post_ra>
